<compile_context>
chip_gen: v5e
topology: v5e:2x2
jax: 0.10.0
libtpu: 0.0.40
codegen_flags: <defaults>
</compile_context>

<pallas_src>
import jax
import jax.numpy as jnp
from jax.experimental import pallas as pl
from jax.experimental.pallas import tpu as pltpu

# ---- model hyper-parameters (synthetic, deterministic, small) ---------------
VOCAB = 100            # len(DataSet.getTEXT().vocab)
DIM = 32               # embedding_dim
CLA = 8                # class_number
KNUM = 128             # Knum (scaled down from 256 for small shapes)
KS = (2, 3, 4)         # Ks
BATCH = 2
SEQ = 16               # sequence length (T)

K_MAX = max(KS)                                     # 4
UNFOLD_D = K_MAX * DIM                              # 128  (lane-dense contraction)
C3 = len(KS) * KNUM                                 # 384  (concat'd conv channels)
T_OUT_PAD = ((SEQ - min(KS) + 1 + 7) // 8) * 8      # 16   (sublane-aligned)
T_TOK_PAD = T_OUT_PAD + K_MAX - 1                   # 19   (padded token length)
B_PAD = ((BATCH + 7) // 8) * 8                      # 8    (sublane-aligned batch)
CLA_PAD = 128                                       # lane-dense FC output


def textcnn_kernel(x_ref, w_ref, mask_ref, b_ref, fcw_ref, fcb_ref, o_ref):
    """Whole (padded) batch in one kernel invocation.

    x_ref   : (B_PAD*T_OUT_PAD, K_MAX*D) bf16  im2col'd embedded tokens
    w_ref   : (K_MAX*D, 3*KNUM)          bf16  packed conv weights (zero rows K<4)
    mask_ref: (T_OUT_PAD, 3*KNUM)        f32   additive {0,-1e30} time-validity mask
    b_ref   : (1, 3*KNUM)                f32   packed conv biases
    fcw_ref : (3*KNUM, CLA_PAD)          bf16  FC weight, zero-padded to 128 lanes
    fcb_ref : (1, CLA_PAD)               f32   FC bias, zero-padded
    o_ref   : (B_PAD, CLA_PAD)           f32   padded logits (unmasked store)
    """
    # conv for all widths == one fused matmul on the MXU (bf16 in, f32 acc)
    conv = jnp.dot(x_ref[...], w_ref[...],
                   preferred_element_type=jnp.float32)        # (Bp*Tp, 3*KNUM)
    conv = conv.reshape(B_PAD, T_OUT_PAD, C3)                 # (Bp, Tp, 3*KNUM)

    # precomputed additive mask kills time positions that are invalid per
    # kernel-width group (and the sublane row-pad) before the max-pool
    conv = conv + mask_ref[...][None, :, :]

    # global max-pool over time (XLU sublane reduce)
    pooled = jnp.max(conv, axis=1)                            # (Bp, 3*KNUM)

    # bias + ReLU hoisted past the max-pool: max_t relu(a_t+b) == relu(max_t a_t + b)
    pooled = jnp.maximum(pooled + b_ref[...], 0.0)

    # dropout(p=0.5): identity in eval/inference mode
    # TODO(synk): no RNG dropout mask (eval-mode forward only).
    logits = jnp.dot(pooled.astype(jnp.bfloat16), fcw_ref[...],
                     preferred_element_type=jnp.float32) + fcb_ref[...]
    o_ref[...] = logits.astype(o_ref.dtype)                   # (Bp, CLA_PAD)


def pack_params(params):
    """One-time constant packing (hoisted out of the per-call forward)."""
    convs = params["convs"]
    fcw, fcb = params["fc"]

    w_packed = jnp.zeros((UNFOLD_D, C3), jnp.bfloat16)
    b_packed = jnp.zeros((1, C3), jnp.float32)
    mask_add = jnp.zeros((T_OUT_PAD, C3), jnp.float32)
    t_idx = jnp.arange(T_OUT_PAD)[:, None]
    for g, ((w, b), K) in enumerate(zip(convs, KS)):
        w_packed = w_packed.at[:K * DIM, g * KNUM:(g + 1) * KNUM].set(
            w.reshape(K * DIM, KNUM).astype(jnp.bfloat16))
        b_packed = b_packed.at[:, g * KNUM:(g + 1) * KNUM].set(
            b.astype(jnp.float32))
        col_mask = jnp.where(t_idx < SEQ - K + 1, 0.0, -1e30)
        mask_add = mask_add.at[:, g * KNUM:(g + 1) * KNUM].set(
            jnp.broadcast_to(col_mask, (T_OUT_PAD, KNUM)))

    fcw_pad = jnp.zeros((C3, CLA_PAD), jnp.bfloat16).at[:, :CLA].set(
        fcw.astype(jnp.bfloat16))
    fcb_pad = jnp.zeros((1, CLA_PAD), jnp.float32).at[:, :CLA].set(
        fcb.astype(jnp.float32))

    # constant im2col position index: pos[t, k] = t + k into the padded tokens
    pos = (jnp.arange(T_OUT_PAD)[:, None]
           + jnp.arange(K_MAX)[None, :]).astype(jnp.int32)

    return {
        "embed_bf16": params["embed"].astype(jnp.bfloat16),
        "w": w_packed, "b": b_packed, "mask": mask_add,
        "fcw": fcw_pad, "fcb": fcb_pad, "pos": pos,
    }


def textcnn_forward(tokens, packed):
    """tokens: (B, T) int32 -> logits (B, CLA)."""
    B, T = tokens.shape
    assert T == SEQ

    # ---- minimal per-call glue: pad -> index gather -> embedding gather ------
    tokens_pad = jnp.pad(tokens, ((0, B_PAD - B), (0, T_TOK_PAD - T)))
    tok_idx = tokens_pad[:, packed["pos"]]                    # (Bp, Tp, K_MAX) i32
    cols = packed["embed_bf16"][tok_idx]                      # (Bp, Tp, K_MAX, D) bf16
    cols = cols.reshape(B_PAD * T_OUT_PAD, UNFOLD_D)          # (128, 128)

    full = lambda *shape: pl.BlockSpec(shape, lambda i: (0,) * len(shape))

    flops = 2 * (B_PAD * T_OUT_PAD) * UNFOLD_D * C3 + 2 * B_PAD * C3 * CLA_PAD
    bytes_accessed = (B_PAD * T_OUT_PAD * UNFOLD_D * 2 + UNFOLD_D * C3 * 2
                      + T_OUT_PAD * C3 * 4 + C3 * 4 + C3 * CLA_PAD * 2
                      + CLA_PAD * 4 + B_PAD * CLA_PAD * 4)

    out = pl.pallas_call(
        textcnn_kernel,
        out_shape=jax.ShapeDtypeStruct((B_PAD, CLA_PAD), jnp.float32),
        grid_spec=pltpu.PrefetchScalarGridSpec(
            num_scalar_prefetch=0,
            grid=(1,),                                  # whole padded batch, one step
            in_specs=[
                full(B_PAD * T_OUT_PAD, UNFOLD_D),      # im2col'd activations (128,128)
                full(UNFOLD_D, C3),                     # packed conv weights
                full(T_OUT_PAD, C3),                    # additive time-validity mask
                full(1, C3),                            # packed conv biases
                full(C3, CLA_PAD),                      # FC weight (padded)
                full(1, CLA_PAD),                       # FC bias (padded)
            ],
            out_specs=full(B_PAD, CLA_PAD),
        ),
        compiler_params=pltpu.CompilerParams(
            dimension_semantics=("arbitrary",)),
        cost_estimate=pl.CostEstimate(flops=flops, transcendentals=0,
                                      bytes_accessed=bytes_accessed),
    )(cols, packed["w"], packed["mask"], packed["b"],
      packed["fcw"], packed["fcb"])

    return out[:B, :CLA]


def init_params(key):
    keys = jax.random.split(key, 10)
    embed = jax.random.normal(keys[0], (VOCAB, DIM), jnp.float32) * 0.1
    convs = []
    for i, K in enumerate(KS):
        w = (jax.random.normal(keys[1 + i], (K, DIM, KNUM), jnp.float32)
             * 0.05).astype(jnp.bfloat16)
        b = jax.random.normal(keys[4 + i], (1, KNUM), jnp.float32) * 0.01
        convs.append((w, b))
    fcw = (jax.random.normal(keys[7], (len(KS) * KNUM, CLA), jnp.float32)
           * 0.05).astype(jnp.bfloat16)
    fcb = jax.random.normal(keys[8], (1, CLA), jnp.float32) * 0.01
    return {"embed": embed, "convs": convs, "fc": (fcw, fcb)}


def reference_forward(tokens, params):
    """Pure-JAX reference mirroring the PyTorch forward (eval mode).

    Uses the same bf16 rounding points as the kernel (weights are stored bf16,
    activations cast to bf16 before each matmul) so the only residual
    difference vs. the kernel is f32 accumulation order (~1e-6).
    """
    x = jnp.take(params["embed"], tokens, axis=0)
    x = x.astype(jnp.bfloat16).astype(jnp.float32)            # (B, T, D)
    feats = []
    for (w, b), K in zip(params["convs"], KS):
        w = w.astype(jnp.float32)                             # (K, D, KNUM)
        t_out = SEQ - K + 1
        acc = jnp.zeros((x.shape[0], t_out, KNUM), jnp.float32)
        for k in range(K):
            acc = acc + jnp.einsum("btd,dc->btc", x[:, k:k + t_out, :], w[k],
                                   preferred_element_type=jnp.float32)
        acc = jnp.maximum(acc + b[None, :, :], 0.0)
        feats.append(jnp.max(acc, axis=1))                    # (B, KNUM)
    pooled = jnp.concatenate(feats, axis=1)                   # (B, 3*KNUM)
    pooled = pooled.astype(jnp.bfloat16).astype(jnp.float32)
    fcw, fcb = params["fc"]
    return pooled @ fcw.astype(jnp.float32) + fcb             # (B, CLA)


if __name__ == "__main__":
    key = jax.random.PRNGKey(0)
    pkey, tkey = jax.random.split(key)
    params = init_params(pkey)
    packed = pack_params(params)          # one-time packing, hoisted out of forward

    tokens = jax.random.randint(tkey, (BATCH, SEQ), 0, VOCAB, jnp.int32)

    fwd = jax.jit(textcnn_forward)
    logits = jax.block_until_ready(fwd(tokens, packed))

    ref = reference_forward(tokens, params)
    assert logits.shape == (BATCH, CLA)
    assert jnp.allclose(logits, ref, atol=1e-3, rtol=1e-3), "mismatch vs reference"

    print("KERNEL_OK")
</pallas_src>

<mosaic_0001>
module attributes {stable_mosaic.version = 11 : i64} {
  func.func @textcnn_kernel(%arg0: i32, %arg1: memref<128x128xbf16, #tpu.memory_space<vmem>>, %arg2: memref<128x384xbf16, #tpu.memory_space<vmem>>, %arg3: memref<16x384xf32, #tpu.memory_space<vmem>>, %arg4: memref<1x384xf32, #tpu.memory_space<vmem>>, %arg5: memref<384x128xbf16, #tpu.memory_space<vmem>>, %arg6: memref<1x128xf32, #tpu.memory_space<vmem>>, %arg7: memref<8x128xf32, #tpu.memory_space<vmem>>) attributes {dimension_semantics = [#tpu.dimension_semantics<arbitrary>], iteration_bounds = array<i64: 1>, scalar_prefetch = 0 : i64, scratch_operands = 0 : i64, tpu.core_type = #tpu.core_type<tc>, window_params = [{pipeline_mode = #tpu.pipeline_mode<synchronous>, transform_indices = @transform_0, window_bounds = array<i64: 128, 128>}, {pipeline_mode = #tpu.pipeline_mode<synchronous>, transform_indices = @transform_1, window_bounds = array<i64: 128, 384>}, {pipeline_mode = #tpu.pipeline_mode<synchronous>, transform_indices = @transform_2, window_bounds = array<i64: 16, 384>}, {pipeline_mode = #tpu.pipeline_mode<synchronous>, transform_indices = @transform_3, window_bounds = array<i64: 1, 384>}, {pipeline_mode = #tpu.pipeline_mode<synchronous>, transform_indices = @transform_4, window_bounds = array<i64: 384, 128>}, {pipeline_mode = #tpu.pipeline_mode<synchronous>, transform_indices = @transform_5, window_bounds = array<i64: 1, 128>}, {pipeline_mode = #tpu.pipeline_mode<synchronous>, transform_indices = @transform_6, window_bounds = array<i64: 8, 128>}]} {
    %c0 = arith.constant 0 : index
    %c0_0 = arith.constant 0 : index
    %0 = vector.load %arg1[%c0, %c0_0] : memref<128x128xbf16, #tpu.memory_space<vmem>>, vector<128x128xbf16>
    %c0_1 = arith.constant 0 : index
    %c0_2 = arith.constant 0 : index
    %1 = vector.load %arg2[%c0_1, %c0_2] : memref<128x384xbf16, #tpu.memory_space<vmem>>, vector<128x384xbf16>
    %cst = arith.constant dense<0.000000e+00> : vector<128x384xf32>
    %2 = tpu.matmul %0, %1, %cst {dimension_numbers = #tpu.dot_dimension_numbers<[1], [0], [0], [1], [0, 0, 1, 1], [], []>} : vector<128x128xbf16>, vector<128x384xbf16>, vector<128x384xf32> -> vector<128x384xf32>
    %3 = vector.shape_cast %2 : vector<128x384xf32> to vector<8x16x384xf32>
    %c0_3 = arith.constant 0 : index
    %c0_4 = arith.constant 0 : index
    %4 = vector.load %arg3[%c0_3, %c0_4] : memref<16x384xf32, #tpu.memory_space<vmem>>, vector<16x384xf32>
    %5 = vector.shape_cast %4 : vector<16x384xf32> to vector<1x16x384xf32>
    %6 = vector.broadcast %5 : vector<1x16x384xf32> to vector<8x16x384xf32>
    %7 = arith.addf %3, %6 : vector<8x16x384xf32>
    %cst_5 = arith.constant dense<0xFF800000> : vector<8x384xf32>
    %8 = vector.multi_reduction <maximumf>, %7, %cst_5 [1] : vector<8x16x384xf32> to vector<8x384xf32>
    %c0_6 = arith.constant 0 : index
    %c0_7 = arith.constant 0 : index
    %9 = vector.load %arg4[%c0_6, %c0_7] : memref<1x384xf32, #tpu.memory_space<vmem>>, vector<1x384xf32>
    %10 = vector.broadcast %9 : vector<1x384xf32> to vector<8x384xf32>
    %11 = arith.addf %8, %10 : vector<8x384xf32>
    %cst_8 = arith.constant 0.000000e+00 : f32
    %12 = vector.broadcast %cst_8 : f32 to vector<8x384xf32>
    %13 = arith.maximumf %11, %12 : vector<8x384xf32>
    %14 = arith.truncf %13 : vector<8x384xf32> to vector<8x384xbf16>
    %c0_9 = arith.constant 0 : index
    %c0_10 = arith.constant 0 : index
    %15 = vector.load %arg5[%c0_9, %c0_10] : memref<384x128xbf16, #tpu.memory_space<vmem>>, vector<384x128xbf16>
    %cst_11 = arith.constant dense<0.000000e+00> : vector<8x128xf32>
    %16 = tpu.matmul %14, %15, %cst_11 {dimension_numbers = #tpu.dot_dimension_numbers<[1], [0], [0], [1], [0, 0, 1, 1], [], []>} : vector<8x384xbf16>, vector<384x128xbf16>, vector<8x128xf32> -> vector<8x128xf32>
    %c0_12 = arith.constant 0 : index
    %c0_13 = arith.constant 0 : index
    %17 = vector.load %arg6[%c0_12, %c0_13] : memref<1x128xf32, #tpu.memory_space<vmem>>, vector<1x128xf32>
    %18 = vector.broadcast %17 : vector<1x128xf32> to vector<8x128xf32>
    %19 = arith.addf %16, %18 : vector<8x128xf32>
    %c0_14 = arith.constant 0 : index
    %c0_15 = arith.constant 0 : index
    %20 = vector.load %arg7[%c0_14, %c0_15] : memref<8x128xf32, #tpu.memory_space<vmem>>, vector<8x128xf32>
    tpu.vector_store %arg7[%c0_14, %c0_15], %19 {strides = array<i32>} : memref<8x128xf32, #tpu.memory_space<vmem>>, vector<8x128xf32>,
    return
  }
  func.func @transform_0(%arg0: i32) -> (i32, i32) {
    %c0_i32 = arith.constant 0 : i32
    %c0_i32_0 = arith.constant 0 : i32
    %c0_i32_1 = arith.constant 0 : i32
    return %c0_i32, %c0_i32_0 : i32, i32
  }
  func.func @transform_1(%arg0: i32) -> (i32, i32) {
    %c0_i32 = arith.constant 0 : i32
    %c0_i32_0 = arith.constant 0 : i32
    %c0_i32_1 = arith.constant 0 : i32
    return %c0_i32, %c0_i32_0 : i32, i32
  }
  func.func @transform_2(%arg0: i32) -> (i32, i32) {
    %c0_i32 = arith.constant 0 : i32
    %c0_i32_0 = arith.constant 0 : i32
    %c0_i32_1 = arith.constant 0 : i32
    return %c0_i32, %c0_i32_0 : i32, i32
  }
  func.func @transform_3(%arg0: i32) -> (i32, i32) {
    %c0_i32 = arith.constant 0 : i32
    %c0_i32_0 = arith.constant 0 : i32
    %c0_i32_1 = arith.constant 0 : i32
    return %c0_i32, %c0_i32_0 : i32, i32
  }
  func.func @transform_4(%arg0: i32) -> (i32, i32) {
    %c0_i32 = arith.constant 0 : i32
    %c0_i32_0 = arith.constant 0 : i32
    %c0_i32_1 = arith.constant 0 : i32
    return %c0_i32, %c0_i32_0 : i32, i32
  }
  func.func @transform_5(%arg0: i32) -> (i32, i32) {
    %c0_i32 = arith.constant 0 : i32
    %c0_i32_0 = arith.constant 0 : i32
    %c0_i32_1 = arith.constant 0 : i32
    return %c0_i32, %c0_i32_0 : i32, i32
  }
  func.func @transform_6(%arg0: i32) -> (i32, i32) {
    %c0_i32 = arith.constant 0 : i32
    %c0_i32_0 = arith.constant 0 : i32
    %c0_i32_1 = arith.constant 0 : i32
    return %c0_i32, %c0_i32_0 : i32, i32
  }
}

</mosaic_0001>

<bundles_post_ra>
// kernel: textcnn_forward.1
= control target key start
LH: loop header
LB: loop body
LE: loop exit
PB: predicated region body
PF: predicated region fallthrough
CT: control target
= control target key end

     0   :  { %vm797_vm0 = vcmask 1041409   ;;  %vm800_vm1 = vcmask 1042434   ;;  %vm803_vm2 = vcmask 1043459   ;;  %vm806_vm3 = vcmask 1044484   ;;  %s1769_s1 = inlined_call_operand.vmem [shape: bf16[128,384], index: 1, kind: input, shape index: {}]   ;;  %s1770_s0 = inlined_call_operand.vmem [shape: bf16[128,128], index: 0, kind: input, shape index: {}]   ;;  %s1771_s2 = inlined_call_operand.vmem [shape: f32[16,384], index: 2, kind: input, shape index: {}]   ;;  %s1772_s3 = inlined_call_operand.vmem [shape: f32[1,384], index: 3, kind: input, shape index: {}]   ;;  %s1773_s5 = inlined_call_operand.vmem [shape: f32[1,128], index: 5, kind: input, shape index: {}]   ;;  %s1774_s4 = inlined_call_operand.vmem [shape: bf16[384,128], index: 4, kind: input, shape index: {}]   ;;  %s1775_s6 = inlined_call_operand.vmem [shape: f32[8,128], index: 6, kind: output, shape index: {}]  }
   0x1   :  { %v1157_v0 = vld [vmem:[%s1769_s1 + $0xa8] sm:$0xf]  ;;  %v1293_v1 = vld [vmem:[%s1769_s1 + $0xb0] sm:$0xf0]  ;;  %v1292_v2 = vld [vmem:[%s1769_s1 + $0xac] sm:$0xf] }
   0x2   :  { %v1158_v3 = vor.u32 %v1293_v1, %v1157_v0  ;;  %v1159_v4 = vld [vmem:[%s1769_s1 + $0xb4] sm:$0xf0]  ;;  %v1165_v5 = vld [vmem:[%s1769_s1 + $0xb0] sm:$0xf]  ;;  %v1294_v6 = vld [vmem:[%s1769_s1 + $0xb8] sm:$0xf0] }
   0x3   :  { %v1162_v7 = vor.u32 %v1292_v2, %v1159_v4  ;;  %v1166_v8 = vor.u32 %v1294_v6, %v1165_v5  ;;  %v1145_v9 = vld [vmem:[%s1769_s1 + $0x90] sm:$0xf]  ;;  %v1290_v10 = vld [vmem:[%s1769_s1 + $0x98] sm:$0xf0]  ;;  %v1289_v11 = vld [vmem:[%s1769_s1 + $0x94] sm:$0xf] }
   0x4   :  { %247 = vmatpush.bf16.msra.mxu0 %v1158_v3  ;;  %v1146_v12 = vor.u32 %v1290_v10, %v1145_v9  ;;  %v1147_v13 = vld [vmem:[%s1769_s1 + $0x9c] sm:$0xf0]  ;;  %v1153_v14 = vld [vmem:[%s1769_s1 + $0x98] sm:$0xf]  ;;  %v1291_v15 = vld [vmem:[%s1769_s1 + $0xa0] sm:$0xf0] }
   0x5   :  { %296 = vmatpush.bf16.msra.mxu1 %v1162_v7  ;;  %345 = vmatpush.bf16.msra.mxu2 %v1166_v8  ;;  %v1150_v16 = vor.u32 %v1289_v11, %v1147_v13  ;;  %v1154_v17 = vor.u32 %v1291_v15, %v1153_v14  ;;  %v1133_v18 = vld [vmem:[%s1769_s1 + $0x78] sm:$0xf]  ;;  %v1287_v19 = vld [vmem:[%s1769_s1 + $0x80] sm:$0xf0]  ;;  %v1286_v20 = vld [vmem:[%s1769_s1 + $0x7c] sm:$0xf] }
   0x6   :  { %v1135_v21 = vld [vmem:[%s1769_s1 + $0x84] sm:$0xf0]  ;;  %v1141_v22 = vld [vmem:[%s1769_s1 + $0x80] sm:$0xf]  ;;  %v1288_v23 = vld [vmem:[%s1769_s1 + $0x88] sm:$0xf0]  ;;  %v1134_v24 = vor.u32 %v1287_v19, %v1133_v18 }
   0x7   :  { %v1138_v25 = vor.u32 %v1286_v20, %v1135_v21  ;;  %v1142_v26 = vor.u32 %v1288_v23, %v1141_v22  ;;  %v1121_v27 = vld [vmem:[%s1769_s1 + $0x60] sm:$0xf]  ;;  %v1284_v28 = vld [vmem:[%s1769_s1 + $0x68] sm:$0xf0]  ;;  %v1283_v29 = vld [vmem:[%s1769_s1 + $0x64] sm:$0xf] }
   0x8   :  { %248 = vmatpush.bf16.msra.mxu0 %v1146_v12  ;;  %v1123_v30 = vld [vmem:[%s1769_s1 + $0x6c] sm:$0xf0]  ;;  %v1129_v31 = vld [vmem:[%s1769_s1 + $0x68] sm:$0xf]  ;;  %v1285_v32 = vld [vmem:[%s1769_s1 + $0x70] sm:$0xf0]  ;;  %v1122_v33 = vor.u32 %v1284_v28, %v1121_v27 }
   0x9   :  { %297 = vmatpush.bf16.msra.mxu1 %v1150_v16  ;;  %346 = vmatpush.bf16.msra.mxu2 %v1154_v17  ;;  %v1126_v34 = vor.u32 %v1283_v29, %v1123_v30  ;;  %v1130_v35 = vor.u32 %v1285_v32, %v1129_v31  ;;  %v1109_v36 = vld [vmem:[%s1769_s1 + $0x48] sm:$0xf]  ;;  %v1281_v37 = vld [vmem:[%s1769_s1 + $0x50] sm:$0xf0]  ;;  %v1280_v38 = vld [vmem:[%s1769_s1 + $0x4c] sm:$0xf] }
   0xa   :  { %v1111_v39 = vld [vmem:[%s1769_s1 + $0x54] sm:$0xf0]  ;;  %v1117_v40 = vld [vmem:[%s1769_s1 + $0x50] sm:$0xf]  ;;  %v1282_v41 = vld [vmem:[%s1769_s1 + $0x58] sm:$0xf0]  ;;  %v1110_v42 = vor.u32 %v1281_v37, %v1109_v36 }
   0xb   :  { %v1114_v43 = vor.u32 %v1280_v38, %v1111_v39  ;;  %v1118_v44 = vor.u32 %v1282_v41, %v1117_v40  ;;  %v1097_v45 = vld [vmem:[%s1769_s1 + $0x30] sm:$0xf]  ;;  %v1278_v46 = vld [vmem:[%s1769_s1 + $0x38] sm:$0xf0]  ;;  %v1277_v47 = vld [vmem:[%s1769_s1 + $0x34] sm:$0xf] }
   0xc   :  { %249 = vmatpush.bf16.msra.mxu0 %v1134_v24  ;;  %v1099_v48 = vld [vmem:[%s1769_s1 + $0x3c] sm:$0xf0]  ;;  %v1105_v49 = vld [vmem:[%s1769_s1 + $0x38] sm:$0xf]  ;;  %v1279_v50 = vld [vmem:[%s1769_s1 + $0x40] sm:$0xf0]  ;;  %v1098_v51 = vor.u32 %v1278_v46, %v1097_v45 }
   0xd   :  { %298 = vmatpush.bf16.msra.mxu1 %v1138_v25  ;;  %347 = vmatpush.bf16.msra.mxu2 %v1142_v26  ;;  %v1102_v52 = vor.u32 %v1277_v47, %v1099_v48  ;;  %v1106_v53 = vor.u32 %v1279_v50, %v1105_v49  ;;  %v1085_v54 = vld [vmem:[%s1769_s1 + $0x18] sm:$0xf]  ;;  %v1275_v55 = vld [vmem:[%s1769_s1 + $0x20] sm:$0xf0]  ;;  %v1274_v56 = vld [vmem:[%s1769_s1 + $0x1c] sm:$0xf] }
   0xe   :  { %v1087_v57 = vld [vmem:[%s1769_s1 + $0x24] sm:$0xf0]  ;;  %v1093_v58 = vld [vmem:[%s1769_s1 + $0x20] sm:$0xf]  ;;  %v1276_v59 = vld [vmem:[%s1769_s1 + $0x28] sm:$0xf0]  ;;  %v1086_v60 = vor.u32 %v1275_v55, %v1085_v54 }
   0xf   :  { %v1090_v61 = vor.u32 %v1274_v56, %v1087_v57  ;;  %v1094_v62 = vor.u32 %v1276_v59, %v1093_v58  ;;  %v1073_v63 = vld [vmem:[%s1769_s1] sm:$0xf]  ;;  %v1272_v0 = vld [vmem:[%s1769_s1 + $0x8] sm:$0xf0]  ;;  %v1271_v1 = vld [vmem:[%s1769_s1 + $0x4] sm:$0xf] }
  0x10   :  { %250 = vmatpush.bf16.msra.mxu0 %v1122_v33  ;;  %v1075_v2 = vld [vmem:[%s1769_s1 + $0xc] sm:$0xf0]  ;;  %v1081_v3 = vld [vmem:[%s1769_s1 + $0x8] sm:$0xf]  ;;  %v1273_v4 = vld [vmem:[%s1769_s1 + $0x10] sm:$0xf0]  ;;  %v1074_v5 = vor.u32 %v1272_v0, %v1073_v63 }
  0x11   :  { %299 = vmatpush.bf16.msra.mxu1 %v1126_v34  ;;  %348 = vmatpush.bf16.msra.mxu2 %v1130_v35  ;;  %v1078_v6 = vor.u32 %v1271_v1, %v1075_v2  ;;  %v1082_v7 = vor.u32 %v1273_v4, %v1081_v3  ;;  %v1263_v8 = vld [vmem:[%s1770_s0] sm:$0xff]  ;;  %v1264_v9 = vld [vmem:[%s1770_s0 + $0x8] sm:$0xff]  ;;  %v1265_v10 = vld [vmem:[%s1770_s0 + $0x10] sm:$0xff]  ;;  %vm809_vm4 = vcmask 1045509   ;;  %vm812_vm5 = vcmask 1046534  }
  0x12   :  { %v1266_v11 = vld [vmem:[%s1770_s0 + $0x18] sm:$0xff]  ;;  %v1267_v12 = vld [vmem:[%s1770_s0 + $0x20] sm:$0xff]  ;;  %v1268_v13 = vld [vmem:[%s1770_s0 + $0x28] sm:$0xff]  ;;  %vm815_vm6 = vcmask 1047559  }
  0x13   :  { %v1269_v14 = vld [vmem:[%s1770_s0 + $0x30] sm:$0xff]  ;;  %v1270_v15 = vld [vmem:[%s1770_s0 + $0x38] sm:$0xff]  ;;  %v1526_v18 = vld [vmem:[%s1771_s2 + $0x8] sm:$0xff] }
  0x14   :  { %251 = vmatpush.bf16.msra.mxu0 %v1110_v42  ;;  %v1531_v19 = vld [vmem:[%s1771_s2] sm:$0xff]  ;;  %v1536_v20 = vld [vmem:[%s1771_s2 + $0x18] sm:$0xff]  ;;  %v1550_v29 = vld [vmem:[%s1771_s2 + $0x10] sm:$0xff] }
  0x15   :  { %300 = vmatpush.bf16.msra.mxu1 %v1114_v43  ;;  %349 = vmatpush.bf16.msra.mxu2 %v1118_v44  ;;  %v1541_v22 = vld [vmem:[%s1771_s2 + $0x20] sm:$0xff]  ;;  %v1555_v33 = vld [vmem:[%s1771_s2 + $0x28] sm:$0xff] }
  0x18   :  { %252 = vmatpush.bf16.msra.mxu0 %v1098_v51 }
  0x19   :  { %301 = vmatpush.bf16.msra.mxu1 %v1102_v52  ;;  %350 = vmatpush.bf16.msra.mxu2 %v1106_v53 }
  0x1c   :  { %253 = vmatpush.bf16.msra.mxu0 %v1086_v60  ;;  %v616_v60 = vld [vmem:[%s1772_s3] sm:$0x7] }
  0x1d   :  { %302 = vmatpush.bf16.msra.mxu1 %v1090_v61  ;;  %351 = vmatpush.bf16.msra.mxu2 %v1094_v62 }
  0x20   :  { %254 = vmatpush.bf16.msra.mxu0 %v1074_v5  ;;  %v1567_v5 = vperm.slane %v616_v60, 0 }
  0x21   :  { %303 = vmatpush.bf16.msra.mxu1 %v1078_v6  ;;  %352 = vmatpush.bf16.msra.mxu2 %v1082_v7 }
  0x23   :  { %255 = vmatmul.bf16.vlgmr.msra.gmra.mxu0 %v1263_v8 }
  0x24   :  { %304 = vmatmul.bf16.vlgmr.msra.gmra.mxu1 %v1263_v8  ;;  %353 = vmatmul.bf16.vlgmr.msra.gmra.mxu2 %v1263_v8 }
  0x33   :  { %260 = vmatmul.bf16.gmra.mxu0 %v1264_v9 }
  0x34   :  { %309 = vmatmul.bf16.gmra.mxu1 %v1264_v9  ;;  %358 = vmatmul.bf16.gmra.mxu2 %v1264_v9 }
  0x43   :  { %265 = vmatmul.bf16.gmra.mxu0 %v1265_v10 }
  0x44   :  { %314 = vmatmul.bf16.gmra.mxu1 %v1265_v10  ;;  %363 = vmatmul.bf16.gmra.mxu2 %v1265_v10  ;;  %v1570_v10 = vperm.slane %v616_v60, 1 }
  0x53   :  { %270 = vmatmul.bf16.gmra.mxu0 %v1266_v11 }
  0x54   :  { %319 = vmatmul.bf16.gmra.mxu1 %v1266_v11  ;;  %368 = vmatmul.bf16.gmra.mxu2 %v1266_v11 }
  0x63   :  { %275 = vmatmul.bf16.gmra.mxu0 %v1267_v12 }
  0x64   :  { %324 = vmatmul.bf16.gmra.mxu1 %v1267_v12  ;;  %373 = vmatmul.bf16.gmra.mxu2 %v1267_v12 }
  0x73   :  { %280 = vmatmul.bf16.gmra.mxu0 %v1268_v13 }
  0x74   :  { %329 = vmatmul.bf16.gmra.mxu1 %v1268_v13  ;;  %378 = vmatmul.bf16.gmra.mxu2 %v1268_v13 }
  0x83   :  { %285 = vmatmul.bf16.gmra.mxu0 %v1269_v14 }
  0x84   :  { %334 = vmatmul.bf16.gmra.mxu1 %v1269_v14  ;;  %383 = vmatmul.bf16.gmra.mxu2 %v1269_v14 }
  0x93   :  { %290 = vmatmul.bf16.gmra.mxu0 %v1270_v15 }
  0x94   :  { %339 = vmatmul.bf16.gmra.mxu1 %v1270_v15  ;;  %388 = vmatmul.bf16.gmra.mxu2 %v1270_v15 }
  0xa0   :  { %v256_v16 = vpop.f32.mrf.mxu0 }
  0xa1   :  { %v305_v17 = vpop.f32.mrf.mxu1  ;;  %v400_v25 = vadd.f32 %v1531_v19, %v256_v16 }
  0xa2   :  { %v401_v23 = vadd.f32 %v1526_v18, %v305_v17 }
  0xa7   :  { %v354_v21 = vpop.f32.mrf.mxu2 }
  0xa8   :  { %v258_v24 = vpop.f32.mrf.mxu0  ;;  %v402_v34 = vadd.f32 %v1550_v29, %v354_v21 }
  0xa9   :  { %v403_v26 = vadd.f32 %v1536_v20, %v258_v24  ;;  %v307_v27 = vpop.f32.mrf.mxu1 }
  0xaa   :  { %v404_v28 = vadd.f32 %v1541_v22, %v307_v27 }
  0xab   :  { %v448_v30 = vmax.f32 %v400_v25, %v403_v26 }
  0xac   :  { %v455_v31 = vmax.f32 %v401_v23, %v404_v28 }
  0xad   :  { %v449_v32 = vrot.slane %v448_v30, 4 }
  0xae   :  { %v456_v35 = vrot.slane %v455_v31, 4 }
  0xaf   :  { %v356_v36 = vpop.f32.mrf.mxu2  ;;  %v450_v37 = vmax.f32 %v448_v30, %v449_v32  ;;  %v1574_v30 = vperm.slane %v616_v60, 2 }
  0xb0   :  { %v405_v38 = vadd.f32 %v1555_v33, %v356_v36  ;;  %v261_v39 = vpop.f32.mrf.mxu0  ;;  %v457_v40 = vmax.f32 %v455_v31, %v456_v35 }
  0xb1   :  { %v310_v41 = vpop.f32.mrf.mxu1  ;;  %v451_v43 = vrot.slane %v450_v37, 2  ;;  %v406_v52 = vadd.f32 %v1531_v19, %v261_v39 }
  0xb2   :  { %v462_v42 = vmax.f32 %v402_v34, %v405_v38  ;;  %v458_v45 = vrot.slane %v457_v40, 2  ;;  %v407_v49 = vadd.f32 %v1526_v18, %v310_v41 }
  0xb3   :  { %v452_v48 = vmax.f32 %v450_v37, %v451_v43 }
  0xb4   :  { %v463_v44 = vrot.slane %v462_v42, 4  ;;  %v459_v51 = vmax.f32 %v457_v40, %v458_v45 }
  0xb5   :  { %v453_v58 = vrot.slane %v452_v48, 1 }
  0xb6   :  { %v464_v46 = vmax.f32 %v462_v42, %v463_v44  ;;  %v460_v61 = vrot.slane %v459_v51, 1 }
  0xb7   :  { %v359_v47 = vpop.f32.mrf.mxu2  ;;  %v454_v4 = vmax.f32 %v452_v48, %v453_v58 }
  0xb8   :  { %v263_v50 = vpop.f32.mrf.mxu0  ;;  %v465_v56 = vrot.slane %v464_v46, 2  ;;  %v408_v63 = vadd.f32 %v1550_v29, %v359_v47  ;;  %v461_v9 = vmax.f32 %v459_v51, %v460_v61 }
  0xb9   :  { %v409_v53 = vadd.f32 %v1536_v20, %v263_v50  ;;  %v312_v54 = vpop.f32.mrf.mxu1  ;;  %v624_v17 = vadd.f32 %v1567_v5, %v454_v4 }
  0xba   :  { %v410_v55 = vadd.f32 %v1541_v22, %v312_v54  ;;  %v466_v1 = vmax.f32 %v464_v46, %v465_v56  ;;  %v625_v24 = vadd.f32 %v1570_v10, %v461_v9 }
  0xbb   :  { %v469_v57 = vmax.f32 %v406_v52, %v409_v53  ;;  %v648_v34 = vmax.f32 %v624_v17, 0.0 }
  0xbc   :  { %v476_v59 = vmax.f32 %v407_v49, %v410_v55  ;;  %v467_v15 = vrot.slane %v466_v1, 1  ;;  %v649_v39 = vmax.f32 %v625_v24, 0.0 }
  0xbd   :  { %v470_v62 = vrot.slane %v469_v57, 4  ;;  %v672_v53 = vpack.c.bf16 %v648_v34, %v648_v34 }
  0xbe   :  { %v477_v0 = vrot.slane %v476_v59, 4  ;;  %v468_v28 = vmax.f32 %v466_v1, %v467_v15  ;;  %v673_v54 = vpack.c.bf16 %v649_v39, %v649_v39 }
  0xbf   :  { %v471_v2 = vmax.f32 %v469_v57, %v470_v62  ;;  %v361_v3 = vpop.f32.mrf.mxu2 }
  0xc0   :  { %v478_v6 = vmax.f32 %v476_v59, %v477_v0  ;;  %v411_v7 = vadd.f32 %v1555_v33, %v361_v3  ;;  %v266_v8 = vpop.f32.mrf.mxu0  ;;  %v626_v47 = vadd.f32 %v1574_v30, %v468_v28 }
  0xc1   :  { %v472_v11 = vrot.slane %v471_v2, 2  ;;  %v315_v12 = vpop.f32.mrf.mxu1  ;;  %v412_v41 = vadd.f32 %v1531_v19, %v266_v8  ;;  %v773_v8 = vunpack.c.l.b16 %v673_v54 }
  0xc2   :  { %v479_v13 = vrot.slane %v478_v6, 2  ;;  %v483_v14 = vmax.f32 %v408_v63, %v411_v7  ;;  %v413_v37 = vadd.f32 %v1526_v18, %v315_v12  ;;  %v650_v61 = vmax.f32 %v626_v47, 0.0 }
  0xc3   :  { %v473_v16 = vmax.f32 %v471_v2, %v472_v11  ;;  %v772_v7 = vunpack.c.l.b16 %v672_v53 }
  0xc4   :  { %v480_v21 = vmax.f32 %v478_v6, %v479_v13  ;;  %v484_v23 = vrot.slane %v483_v14, 4  ;;  %v674_v17 = vpack.c.bf16 %v650_v61, %v650_v61 }
  0xc5   :  { %v474_v25 = vrot.slane %v473_v16, 1 }
  0xc6   :  { %v481_v26 = vrot.slane %v480_v21, 1  ;;  %v485_v27 = vmax.f32 %v483_v14, %v484_v23 }
  0xc7   :  { %v475_v31 = vmax.f32 %v473_v16, %v474_v25  ;;  %v364_v32 = vpop.f32.mrf.mxu2 }
  0xc8   :  { %v482_v35 = vmax.f32 %v480_v21, %v481_v26  ;;  %v486_v36 = vrot.slane %v485_v27, 2  ;;  %v268_v38 = vpop.f32.mrf.mxu0  ;;  %v414_v59 = vadd.f32 %v1550_v29, %v364_v32 }
  0xc9   :  { %v627_v40 = vadd.f32 %v1567_v5, %v475_v31  ;;  %v415_v42 = vadd.f32 %v1536_v20, %v268_v38  ;;  %v317_v43 = vpop.f32.mrf.mxu1 }
  0xca   :  { %v628_v44 = vadd.f32 %v1570_v10, %v482_v35  ;;  %v487_v45 = vmax.f32 %v485_v27, %v486_v36  ;;  %v416_v46 = vadd.f32 %v1541_v22, %v317_v43  ;;  %v774_v35 = vunpack.c.l.b16 %v674_v17 }
  0xcb   :  { %v651_v48 = vmax.f32 %v627_v40, 0.0  ;;  %v490_v49 = vmax.f32 %v412_v41, %v415_v42 }
  0xcc   :  { %v652_v50 = vmax.f32 %v628_v44, 0.0  ;;  %v488_v51 = vrot.slane %v487_v45, 1  ;;  %v497_v52 = vmax.f32 %v413_v37, %v416_v46 }
  0xcd   :  { %v675_v55 = vpack.c.bf16 %v651_v48, %v651_v48  ;;  %v491_v56 = vrot.slane %v490_v49, 4 }
  0xce   :  { %v676_v57 = vpack.c.bf16 %v652_v50, %v652_v50  ;;  %v489_v58 = vmax.f32 %v487_v45, %v488_v51  ;;  %v498_v60 = vrot.slane %v497_v52, 4 }
  0xcf   :  { %v775_v62 = vunpack.c.l.b16 %v675_v55  ;;  %v492_v63 = vmax.f32 %v490_v49, %v491_v56  ;;  %v366_v0 = vpop.f32.mrf.mxu2  ;;  %v1302_v56 = vld [vmem:[%s1774_s4 + $0x38] sm:$0xff] }
  0xd0   :  { %v776_v1 = vunpack.c.l.b16 %v676_v57  ;;  %v629_v2 = vadd.f32 %v1574_v30, %v489_v58  ;;  %v499_v3 = vmax.f32 %v497_v52, %v498_v60  ;;  %v417_v4 = vadd.f32 %v1555_v33, %v366_v0  ;;  %v271_v6 = vpop.f32.mrf.mxu0  ;;  %995 = vmatpush.bf16.msra.mxu3 %v1302_v56 }
  0xd1   :  { %v796_v9 = vrot.slane %v775_v62, 7  ;;  %v493_v11 = vrot.slane %v492_v63, 2  ;;  %v320_v12 = vpop.f32.mrf.mxu1  ;;  %v418_v44 = vadd.f32 %v1531_v19, %v271_v6 }
  0xd2   :  { %v817_v13 = vrot.slane %v776_v1, 7  ;;  %v653_v14 = vmax.f32 %v629_v2, 0.0  ;;  %v500_v15 = vrot.slane %v499_v3, 2  ;;  %v504_v16 = vmax.f32 %v414_v59, %v417_v4 }
  0xd3   :  { %v494_v21 = vmax.f32 %v492_v63, %v493_v11  ;;  %v798_v23 = vsel %vm797_vm0, %v796_v9, %v772_v7  ;;  %v419_v41 = vadd.f32 %v1526_v18, %v320_v12 }
  0xd4   :  { %v1588_v24 = vsel %vm797_vm0, %v817_v13, %v773_v8  ;;  %v677_v25 = vpack.c.bf16 %v653_v14, %v653_v14  ;;  %v501_v26 = vmax.f32 %v499_v3, %v500_v15  ;;  %v505_v27 = vrot.slane %v504_v16, 4  ;;  %v1301_v8 = vld [vmem:[%s1774_s4 + $0x30] sm:$0xff] }
  0xd5   :  { %v495_v28 = vrot.slane %v494_v21, 1  ;;  %996 = vmatpush.bf16.msra.mxu3 %v1301_v8 }
  0xd6   :  { %v777_v31 = vunpack.c.l.b16 %v677_v25  ;;  %v502_v32 = vrot.slane %v501_v26, 1  ;;  %v506_v34 = vmax.f32 %v504_v16, %v505_v27 }
  0xd7   :  { %v496_v36 = vmax.f32 %v494_v21, %v495_v28  ;;  %v369_v37 = vpop.f32.mrf.mxu2  ;;  %v1300_v28 = vld [vmem:[%s1774_s4 + $0x28] sm:$0xff] }
  0xd8   :  { %v831_v38 = vrot.slane %v777_v31, 7  ;;  %v503_v39 = vmax.f32 %v501_v26, %v502_v32  ;;  %v507_v40 = vrot.slane %v506_v34, 2  ;;  %v273_v42 = vpop.f32.mrf.mxu0  ;;  %v420_v61 = vadd.f32 %v1550_v29, %v369_v37 }
  0xd9   :  { %v630_v43 = vadd.f32 %v1567_v5, %v496_v36  ;;  %v421_v45 = vadd.f32 %v1536_v20, %v273_v42  ;;  %v322_v46 = vpop.f32.mrf.mxu1  ;;  %997 = vmatpush.bf16.msra.mxu3 %v1300_v28  ;;  %v1299_v42 = vld [vmem:[%s1774_s4 + $0x20] sm:$0xff] }
  0xda   :  { %v832_v47 = vsel %vm797_vm0, %v831_v38, %v774_v35  ;;  %v631_v48 = vadd.f32 %v1570_v10, %v503_v39  ;;  %v508_v49 = vmax.f32 %v506_v34, %v507_v40  ;;  %v422_v50 = vadd.f32 %v1541_v22, %v322_v46 }
  0xdb   :  { %v654_v51 = vmax.f32 %v630_v43, 0.0  ;;  %v511_v52 = vmax.f32 %v418_v44, %v421_v45 }
  0xdc   :  { %v655_v53 = vmax.f32 %v631_v48, 0.0  ;;  %v509_v54 = vrot.slane %v508_v49, 1  ;;  %v518_v55 = vmax.f32 %v419_v41, %v422_v50 }
  0xdd   :  { %v678_v57 = vpack.c.bf16 %v654_v51, %v654_v51  ;;  %v512_v58 = vrot.slane %v511_v52, 4  ;;  %998 = vmatpush.bf16.msra.mxu3 %v1299_v42  ;;  %v1298_v51 = vld [vmem:[%s1774_s4 + $0x18] sm:$0xff] }
  0xde   :  { %v679_v59 = vpack.c.bf16 %v655_v53, %v655_v53  ;;  %v510_v60 = vmax.f32 %v508_v49, %v509_v54  ;;  %v519_v62 = vrot.slane %v518_v55, 4 }
  0xdf   :  { %v778_v63 = vunpack.c.l.b16 %v678_v57  ;;  %v513_v0 = vmax.f32 %v511_v52, %v512_v58  ;;  %v371_v1 = vpop.f32.mrf.mxu2 }
  0xe0   :  { %v779_v2 = vunpack.c.l.b16 %v679_v59  ;;  %v632_v3 = vadd.f32 %v1574_v30, %v510_v60  ;;  %v520_v4 = vmax.f32 %v518_v55, %v519_v62  ;;  %v423_v6 = vadd.f32 %v1555_v33, %v371_v1  ;;  %v1603_v7 = vpop.f32.mrf.mxu0 }
  0xe1   :  { %v799_v9 = vrot.slane %v778_v63, 6  ;;  %v514_v11 = vrot.slane %v513_v0, 2  ;;  %v1608_v12 = vpop.f32.mrf.mxu1  ;;  %999 = vmatpush.bf16.msra.mxu3 %v1298_v51 }
  0xe2   :  { %v819_v13 = vrot.slane %v779_v2, 6  ;;  %v656_v14 = vmax.f32 %v632_v3, 0.0  ;;  %v521_v15 = vrot.slane %v520_v4, 2  ;;  %v525_v16 = vmax.f32 %v420_v61, %v423_v6  ;;  %v1296_v2 = vld [vmem:[%s1774_s4 + $0x8] sm:$0xff] }
  0xe3   :  { %v515_v17 = vmax.f32 %v513_v0, %v514_v11  ;;  %v801_v21 = vsel %vm800_vm1, %v799_v9, %v798_v23  ;;  %v1295_v11 = vld [vmem:[%s1774_s4] sm:$0xff] }
  0xe4   :  { %v680_v25 = vpack.c.bf16 %v656_v14, %v656_v14  ;;  %v522_v26 = vmax.f32 %v520_v4, %v521_v15  ;;  %v526_v27 = vrot.slane %v525_v16, 4  ;;  %v820_v31 = vsel %vm800_vm1, %v819_v13, %v1588_v24  ;;  %v1310_v14 = vld [vmem:[%s1774_s4 + $0x78] sm:$0xff] }
  0xe5   :  { %v516_v32 = vrot.slane %v515_v17, 1 }
  0xe6   :  { %v780_v34 = vunpack.c.l.b16 %v680_v25  ;;  %v523_v35 = vrot.slane %v522_v26, 1  ;;  %v527_v36 = vmax.f32 %v525_v16, %v526_v27  ;;  %v1309_v25 = vld [vmem:[%s1774_s4 + $0x70] sm:$0xff] }
  0xe7   :  { %v517_v37 = vmax.f32 %v515_v17, %v516_v32  ;;  %v1616_v38 = vpop.f32.mrf.mxu2  ;;  %v424_v17 = vadd.f32 %v1531_v19, %v1603_v7 }
  0xe8   :  { %v833_v39 = vrot.slane %v780_v34, 6  ;;  %v524_v23 = vmax.f32 %v522_v26, %v523_v35  ;;  %v528_v40 = vrot.slane %v527_v36, 2  ;;  %v278_v41 = vpop.f32.mrf.mxu0  ;;  %v1308_v35 = vld [vmem:[%s1774_s4 + $0x68] sm:$0xff] }
  0xe9   :  { %v633_v43 = vadd.f32 %v1567_v5, %v517_v37  ;;  %v1622_v44 = vpop.f32.mrf.mxu1  ;;  %v427_v16 = vadd.f32 %v1536_v20, %v278_v41  ;;  %v1307_v37 = vld [vmem:[%s1774_s4 + $0x60] sm:$0xff] }
  0xea   :  { %v634_v24 = vadd.f32 %v1570_v10, %v524_v23  ;;  %v529_v45 = vmax.f32 %v527_v36, %v528_v40  ;;  %v834_v46 = vsel %vm800_vm1, %v833_v39, %v832_v47  ;;  %v1297_v47 = vld [vmem:[%s1774_s4 + $0x10] sm:$0xff] }
  0xeb   :  { %v657_v48 = vmax.f32 %v633_v43, 0.0  ;;  %1000 = vmatpush.bf16.msra.mxu3 %v1297_v47  ;;  %v532_v26 = vmax.f32 %v424_v17, %v427_v16  ;;  %v1303_v17 = vld [vmem:[%s1774_s4 + $0x40] sm:$0xff] }
  0xec   :  { %v658_v49 = vmax.f32 %v634_v24, 0.0  ;;  %v530_v50 = vrot.slane %v529_v45, 1 }
  0xed   :  { %v681_v52 = vpack.c.bf16 %v657_v48, %v657_v48  ;;  %v533_v7 = vrot.slane %v532_v26, 4  ;;  %v428_v48 = vadd.f32 %v1541_v22, %v1622_v44 }
  0xee   :  { %v682_v53 = vpack.c.bf16 %v658_v49, %v658_v49  ;;  %v531_v54 = vmax.f32 %v529_v45, %v530_v50  ;;  %v1306_v45 = vld [vmem:[%s1774_s4 + $0x58] sm:$0xff] }
  0xef   :  { %v781_v55 = vunpack.c.l.b16 %v681_v52  ;;  %v1629_v56 = vpop.f32.mrf.mxu2  ;;  %1001 = vmatpush.bf16.msra.mxu3 %v1296_v2  ;;  %v534_v39 = vmax.f32 %v532_v26, %v533_v7 }
  0xf0   :  { %v782_v57 = vunpack.c.l.b16 %v682_v53  ;;  %v635_v58 = vadd.f32 %v1574_v30, %v531_v54  ;;  %v281_v59 = vpop.f32.mrf.mxu0 }
  0xf1   :  { %v802_v60 = vrot.slane %v781_v55, 5  ;;  %v330_v61 = vpop.f32.mrf.mxu1  ;;  %v430_v27 = vadd.f32 %v1531_v19, %v281_v59  ;;  %v535_v49 = vrot.slane %v534_v39, 2 }
  0xf2   :  { %v821_v62 = vrot.slane %v782_v57, 5  ;;  %v659_v63 = vmax.f32 %v635_v58, 0.0  ;;  %v431_v50 = vadd.f32 %v1526_v18, %v330_v61 }
  0xf3   :  { %v1636_v0 = vsel %vm803_vm2, %v802_v60, %v801_v21  ;;  %1002 = vmatpush.bf16.msra.mxu3 %v1295_v11  ;;  %v536_v59 = vmax.f32 %v534_v39, %v535_v49 }
  0xf4   :  { %v683_v1 = vpack.c.bf16 %v659_v63, %v659_v63  ;;  %v1642_v3 = vsel %vm803_vm2, %v821_v62, %v820_v31 }
  0xf6   :  { %v783_v4 = vunpack.c.l.b16 %v683_v1 }
  0xf7   :  { %v1644_v6 = vpop.f32.mrf.mxu2  ;;  %1008 = vmatpush.bf16.msrb.mxu3 %v1310_v14 }
  0xf8   :  { %v835_v8 = vrot.slane %v783_v4, 5  ;;  %v283_v9 = vpop.f32.mrf.mxu0  ;;  %v1304_v4 = vld [vmem:[%s1774_s4 + $0x48] sm:$0xff] }
  0xf9   :  { %v332_v13 = vpop.f32.mrf.mxu1  ;;  %v433_v21 = vadd.f32 %v1536_v20, %v283_v9  ;;  %v537_v9 = vrot.slane %v536_v59, 1 }
  0xfa   :  { %v1653_v15 = vsel %vm803_vm2, %v835_v8, %v834_v46  ;;  %v425_v46 = vadd.f32 %v1526_v18, %v1608_v12  ;;  %v434_v51 = vadd.f32 %v1541_v22, %v332_v13  ;;  %v1305_v12 = vld [vmem:[%s1774_s4 + $0x50] sm:$0xff] }
  0xfb   :  { %1009 = vmatpush.bf16.msrb.mxu3 %v1309_v25  ;;  %v553_v32 = vmax.f32 %v430_v27, %v433_v21  ;;  %v538_v26 = vmax.f32 %v536_v59, %v537_v9 }
  0xfc   :  { %v539_v58 = vmax.f32 %v425_v46, %v428_v48  ;;  %v560_v44 = vmax.f32 %v431_v50, %v434_v51 }
  0xfd   :  { %v554_v36 = vrot.slane %v553_v32, 4 }
  0xfe   :  { %v540_v8 = vrot.slane %v539_v58, 4  ;;  %v561_v11 = vrot.slane %v560_v44, 4 }
  0xff   :  { %v1663_v28 = vpop.f32.mrf.mxu2  ;;  %1010 = vmatpush.bf16.msrb.mxu3 %v1308_v35  ;;  %v555_v41 = vmax.f32 %v553_v32, %v554_v36  ;;  %v426_v32 = vadd.f32 %v1550_v29, %v1616_v38  ;;  %v429_v36 = vadd.f32 %v1555_v33, %v1629_v56 }
 0x100   :  { %v286_v31 = vpop.f32.mrf.mxu0  ;;  %v541_v21 = vmax.f32 %v539_v58, %v540_v8  ;;  %v562_v27 = vmax.f32 %v560_v44, %v561_v11  ;;  %v435_v46 = vadd.f32 %v1555_v33, %v1663_v28 }
 0x101   :  { %v335_v34 = vpop.f32.mrf.mxu1  ;;  %v436_v42 = vadd.f32 %v1531_v19, %v286_v31  ;;  %v556_v55 = vrot.slane %v555_v41, 2  ;;  %v546_v50 = vmax.f32 %v426_v32, %v429_v36 }
 0x102   :  { %v437_v53 = vadd.f32 %v1526_v18, %v335_v34 }
 0x103   :  { %1011 = vmatpush.bf16.msrb.mxu3 %v1307_v37  ;;  %v557_v63 = vmax.f32 %v555_v41, %v556_v55 }
 0x105   :  { %v558_v16 = vrot.slane %v557_v63, 1 }
 0x107   :  { %v1671_v23 = vpop.f32.mrf.mxu2  ;;  %1012 = vmatpush.bf16.msrb.mxu3 %v1306_v45  ;;  %v559_v37 = vmax.f32 %v557_v63, %v558_v16  ;;  %v636_v45 = vadd.f32 %v1567_v5, %v538_v26 }
 0x108   :  { %v288_v40 = vpop.f32.mrf.mxu0 }
 0x109   :  { %v439_v43 = vadd.f32 %v1536_v20, %v288_v40  ;;  %v337_v24 = vpop.f32.mrf.mxu1  ;;  %v660_v55 = vmax.f32 %v636_v45, 0.0 }
 0x10a   :  { %v440_v54 = vadd.f32 %v1541_v22, %v337_v24 }
 0x10b   :  { %v574_v52 = vmax.f32 %v436_v42, %v439_v43  ;;  %1013 = vmatpush.bf16.msrb.mxu3 %v1305_v12  ;;  %v542_v42 = vrot.slane %v541_v21, 2  ;;  %v432_v43 = vadd.f32 %v1550_v29, %v1644_v6  ;;  %v639_v6 = vadd.f32 %v1567_v5, %v559_v37 }
 0x10c   :  { %v581_v61 = vmax.f32 %v437_v53, %v440_v54  ;;  %v684_v11 = vpack.c.bf16 %v660_v55, %v660_v55 }
 0x10d   :  { %v575_v57 = vrot.slane %v574_v52, 4 }
 0x10e   :  { %v582_v14 = vrot.slane %v581_v61, 4 }
 0x10f   :  { %v576_v47 = vmax.f32 %v574_v52, %v575_v57  ;;  %v386_v60 = vpop.f32.mrf.mxu2  ;;  %1014 = vmatpush.bf16.msrb.mxu3 %v1304_v4  ;;  %v543_v52 = vmax.f32 %v541_v21, %v542_v42  ;;  %v567_v57 = vmax.f32 %v432_v43, %v435_v46 }
 0x110   :  { %v291_v62 = vpop.f32.mrf.mxu0  ;;  %v583_v34 = vmax.f32 %v581_v61, %v582_v14  ;;  %v663_v61 = vmax.f32 %v639_v6, 0.0 }
 0x111   :  { %v577_v1 = vrot.slane %v576_v47, 2  ;;  %v340_v2 = vpop.f32.mrf.mxu1  ;;  %v442_v39 = vadd.f32 %v1531_v19, %v291_v62  ;;  %v438_v19 = vadd.f32 %v1550_v29, %v1671_v23  ;;  %v544_v63 = vrot.slane %v543_v52, 1 }
 0x112   :  { %v443_v35 = vadd.f32 %v1526_v18, %v340_v2  ;;  %v563_v18 = vrot.slane %v562_v27, 2  ;;  %v584_v48 = vrot.slane %v583_v34, 2  ;;  %v568_v8 = vrot.slane %v567_v57, 4 }
 0x113   :  { %v578_v13 = vmax.f32 %v576_v47, %v577_v1  ;;  %1015 = vmatpush.bf16.msrb.mxu3 %v1303_v17  ;;  %v687_v17 = vpack.c.bf16 %v663_v61, %v663_v61  ;;  %v545_v26 = vmax.f32 %v543_v52, %v544_v63  ;;  %v1318_v63 = vld [vmem:[%s1774_s4 + $0xb8] sm:$0xff] }
 0x114   :  { %v564_v28 = vmax.f32 %v562_v27, %v563_v18  ;;  %v585_v23 = vmax.f32 %v583_v34, %v584_v48  ;;  %v569_v34 = vmax.f32 %v567_v57, %v568_v8 }
 0x115   :  { %v579_v25 = vrot.slane %v578_v13, 1  ;;  %v787_v42 = vunpack.c.l.b16 %v687_v17  ;;  %v637_v43 = vadd.f32 %v1570_v10, %v545_v26 }
 0x116   :  { %v565_v4 = vrot.slane %v564_v28, 1  ;;  %v570_v18 = vrot.slane %v569_v34, 2 }
 0x117   :  { %v389_v31 = vpop.f32.mrf.mxu2  ;;  %v580_v24 = vmax.f32 %v578_v13, %v579_v25  ;;  %v586_v13 = vrot.slane %v585_v23, 1  ;;  %v808_v6 = vrot.slane %v787_v42, 3 }
 0x118   :  { %v293_v7 = vpop.f32.mrf.mxu0  ;;  %v566_v32 = vmax.f32 %v564_v28, %v565_v4 }
 0x119   :  { %v445_v40 = vadd.f32 %v1536_v20, %v293_v7  ;;  %v342_v41 = vpop.f32.mrf.mxu1  ;;  %v441_v20 = vadd.f32 %v1555_v33, %v386_v60  ;;  %v642_v54 = vadd.f32 %v1567_v5, %v580_v24  ;;  %v547_v60 = vrot.slane %v546_v50, 4 }
 0x11a   :  { %v446_v38 = vadd.f32 %v1541_v22, %v342_v41  ;;  %v444_v22 = vadd.f32 %v1550_v29, %v389_v31  ;;  %v784_v7 = vunpack.c.l.b16 %v684_v11  ;;  %v587_v36 = vmax.f32 %v585_v23, %v586_v13 }
 0x11b   :  { %v595_v56 = vmax.f32 %v442_v39, %v445_v40  ;;  %v588_v59 = vmax.f32 %v438_v19, %v441_v20  ;;  %v666_v29 = vmax.f32 %v642_v54, 0.0  ;;  %v548_v27 = vmax.f32 %v546_v50, %v547_v60 }
 0x11c   :  { %v602_v49 = vmax.f32 %v443_v35, %v446_v38  ;;  %v640_v45 = vadd.f32 %v1570_v10, %v566_v32  ;;  %v643_v19 = vadd.f32 %v1570_v10, %v587_v36  ;;  %v1316_v32 = vld [vmem:[%s1774_s4 + $0xa8] sm:$0xff] }
 0x11d   :  { %v596_v51 = vrot.slane %v595_v56, 4  ;;  %v589_v14 = vrot.slane %v588_v59, 4  ;;  %v690_v31 = vpack.c.bf16 %v666_v29, %v666_v29  ;;  %v549_v24 = vrot.slane %v548_v27, 2 }
 0x11e   :  { %v603_v53 = vrot.slane %v602_v49, 4  ;;  %v667_v55 = vmax.f32 %v643_v19, 0.0 }
 0x11f   :  { %v597_v12 = vmax.f32 %v595_v56, %v596_v51  ;;  %v391_v58 = vpop.f32.mrf.mxu2  ;;  %v590_v37 = vmax.f32 %v588_v59, %v589_v14  ;;  %v790_v38 = vunpack.c.l.b16 %v690_v31  ;;  %v805_v56 = vrot.slane %v784_v7, 4  ;;  %v1317_v14 = vld [vmem:[%s1774_s4 + $0xb0] sm:$0xff] }
 0x120   :  { %v604_v44 = vmax.f32 %v602_v49, %v603_v53  ;;  %v447_v47 = vadd.f32 %v1555_v33, %v391_v58  ;;  %v550_v51 = vmax.f32 %v548_v27, %v549_v24  ;;  %v571_v53 = vmax.f32 %v569_v34, %v570_v18 }
 0x121   :  { %v598_v62 = vrot.slane %v597_v12, 2  ;;  %v591_v48 = vrot.slane %v590_v37, 2  ;;  %v811_v52 = vrot.slane %v790_v38, 2  ;;  %v807_v57 = vsel %vm806_vm3, %v805_v56, %v1636_v0 }
 0x122   :  { %v605_v1 = vrot.slane %v604_v44, 2  ;;  %v609_v2 = vmax.f32 %v444_v22, %v447_v47  ;;  %v664_v22 = vmax.f32 %v640_v45, 0.0  ;;  %v572_v61 = vrot.slane %v571_v53, 1 }
 0x123   :  { %v599_v9 = vmax.f32 %v597_v12, %v598_v62  ;;  %v592_v28 = vmax.f32 %v590_v37, %v591_v48 }
 0x124   :  { %v606_v16 = vmax.f32 %v604_v44, %v605_v1  ;;  %v610_v25 = vrot.slane %v609_v2, 4  ;;  %v551_v44 = vrot.slane %v550_v51, 1  ;;  %v688_v60 = vpack.c.bf16 %v664_v22, %v664_v22 }
 0x125   :  { %v600_v21 = vrot.slane %v599_v9, 1  ;;  %v691_v1 = vpack.c.bf16 %v667_v55, %v667_v55  ;;  %v593_v0 = vrot.slane %v592_v28, 1  ;;  %v573_v13 = vmax.f32 %v571_v53, %v572_v61 }
 0x126   :  { %v607_v33 = vrot.slane %v606_v16, 1  ;;  %v611_v40 = vmax.f32 %v609_v2, %v610_v25  ;;  %v788_v11 = vunpack.c.l.b16 %v688_v60 }
 0x127   :  { %v601_v35 = vmax.f32 %v599_v9, %v600_v21  ;;  %v552_v9 = vmax.f32 %v550_v51, %v551_v44  ;;  %v791_v17 = vunpack.c.l.b16 %v691_v1  ;;  %v641_v31 = vadd.f32 %v1574_v30, %v573_v13 }
 0x128   :  { %v608_v39 = vmax.f32 %v606_v16, %v607_v33  ;;  %v612_v49 = vrot.slane %v611_v40, 2  ;;  %v594_v16 = vmax.f32 %v592_v28, %v593_v0  ;;  %v825_v33 = vrot.slane %v788_v11, 3  ;;  %v1311_v28 = vld [vmem:[%s1774_s4 + $0x80] sm:$0xff] }
 0x129   :  { %v645_v41 = vadd.f32 %v1567_v5, %v601_v35  ;;  %v661_v5 = vmax.f32 %v637_v43, 0.0  ;;  %v638_v27 = vadd.f32 %v1574_v30, %v552_v9  ;;  %v827_v35 = vrot.slane %v791_v17, 2 }
 0x12a   :  { %v646_v20 = vadd.f32 %v1570_v10, %v608_v39  ;;  %v613_v12 = vmax.f32 %v611_v40, %v612_v49  ;;  %v810_v10 = vsel %vm809_vm4, %v808_v6, %v807_v57  ;;  %v644_v34 = vadd.f32 %v1574_v30, %v594_v16  ;;  %v1313_v49 = vld [vmem:[%s1774_s4 + $0x90] sm:$0xff] }
 0x12b   :  { %v669_v46 = vmax.f32 %v645_v41, 0.0  ;;  %v685_v59 = vpack.c.bf16 %v661_v5, %v661_v5  ;;  %v813_v47 = vsel %vm812_vm5, %v811_v52, %v810_v10  ;;  %v662_v37 = vmax.f32 %v638_v27, 0.0  ;;  %v1315_v41 = vld [vmem:[%s1774_s4 + $0xa0] sm:$0xff]  ;;  %v1312_v52 = vld [vmem:[%s1774_s4 + $0x88] sm:$0xff] }
 0x12c   :  { %v670_v23 = vmax.f32 %v646_v20, 0.0  ;;  %v614_v29 = vrot.slane %v613_v12, 1  ;;  %v665_v40 = vmax.f32 %v641_v31, 0.0  ;;  %v668_v43 = vmax.f32 %v644_v34, 0.0 }
 0x12d   :  { %v693_v50 = vpack.c.bf16 %v669_v46, %v669_v46  ;;  %v785_v8 = vunpack.c.l.b16 %v685_v59 }
 0x12e   :  { %v694_v4 = vpack.c.bf16 %v670_v23, %v670_v23  ;;  %v615_v21 = vmax.f32 %v613_v12, %v614_v29  ;;  %v689_v18 = vpack.c.bf16 %v665_v40, %v665_v40  ;;  %v692_v46 = vpack.c.bf16 %v668_v43, %v668_v43 }
 0x12f   :  { %v793_v54 = vunpack.c.l.b16 %v693_v50  ;;  %v823_v26 = vrot.slane %v785_v8, 4 }
 0x130   :  { %v794_v25 = vunpack.c.l.b16 %v694_v4  ;;  %v647_v7 = vadd.f32 %v1574_v30, %v615_v21  ;;  %v686_v30 = vpack.c.bf16 %v662_v37, %v662_v37  ;;  %v789_v20 = vunpack.c.l.b16 %v689_v18 }
 0x131   :  { %v814_v58 = vrot.slane %v793_v54, 1  ;;  %v824_v39 = vsel %vm806_vm3, %v823_v26, %v1642_v3  ;;  %v1314_v3 = vld [vmem:[%s1774_s4 + $0x98] sm:$0xff]  ;;  %v792_v50 = vunpack.c.l.b16 %v692_v46 }
 0x132   :  { %v829_v36 = vrot.slane %v794_v25, 1  ;;  %v826_v42 = vsel %vm809_vm4, %v825_v33, %v824_v39  ;;  %v671_v38 = vmax.f32 %v647_v7, 0.0  ;;  %v786_v48 = vunpack.c.l.b16 %v686_v30 }
 0x133   :  { %v816_v62 = vsel %vm815_vm6, %v814_v58, %v813_v47  ;;  %v828_v24 = vsel %vm812_vm5, %v827_v35, %v826_v42  ;;  %v839_v51 = vrot.slane %v789_v20, 3  ;;  %v841_v22 = vrot.slane %v792_v50, 2 }
 0x134   :  { %v845_v2 = vpack.c.b16 %v816_v62, %v816_v62  ;;  %v830_v45 = vsel %vm815_vm6, %v829_v36, %v828_v24  ;;  %v695_v19 = vpack.c.bf16 %v671_v38, %v671_v38  ;;  %v837_v5 = vrot.slane %v786_v48, 4 }
 0x135   :  { %v846_v56 = vpack.c.b16 %v830_v45, %v830_v45 }
 0x136   :  { %1003 = vmatmul.bf16.vlgmr.msra.gmra.mxu3 %v845_v2  ;;  %v795_v6 = vunpack.c.l.b16 %v695_v19  ;;  %v838_v54 = vsel %vm806_vm3, %v837_v5, %v1653_v15  ;;  %v1319_v15 = vld [vmem:[%s1773_s5] ss:$0 sm:$0xff] }
 0x137   :  { %1021 = vmatpush.bf16.msra.mxu3 %v1318_v63  ;;  %v840_v55 = vsel %vm809_vm4, %v839_v51, %v838_v54 }
 0x138   :  { %v843_v53 = vrot.slane %v795_v6, 1  ;;  %v842_v57 = vsel %vm812_vm5, %v841_v22, %v840_v55 }
 0x13a   :  { %v844_v12 = vsel %vm815_vm6, %v843_v53, %v842_v57 }
 0x13b   :  { %1022 = vmatpush.bf16.msra.mxu3 %v1317_v14  ;;  %v847_v10 = vpack.c.b16 %v844_v12, %v844_v12 }
 0x13f   :  { %1023 = vmatpush.bf16.msra.mxu3 %v1316_v32 }
 0x143   :  { %1024 = vmatpush.bf16.msra.mxu3 %v1315_v41 }
 0x146   :  { %1016 = vmatmul.bf16.vlgmr.msrb.gmra.mxu3 %v846_v56 }
 0x147   :  { %1025 = vmatpush.bf16.msra.mxu3 %v1314_v3 }
 0x14b   :  { %1026 = vmatpush.bf16.msra.mxu3 %v1313_v49 }
 0x14f   :  { %1027 = vmatpush.bf16.msra.mxu3 %v1312_v52 }
 0x153   :  { %1028 = vmatpush.bf16.msra.mxu3 %v1311_v28 }
 0x156   :  { %1029 = vmatmul.bf16.vlgmr.msra.gmra.mxu3 %v847_v10 }
 0x1b9   :  { %v1004_v58 = vpop.f32.mrf.mxu3 }
 0x1ba   :  { %v1005_v47 = vadd.f32 %v1319_v15, %v1004_v58 }
 0x1c1   :  { %v1006_v23 = vpop.f32.mrf.mxu3 }
 0x1c9   :  { %v1017_v59 = vpop.f32.mrf.mxu3 }
 0x1ca   :  { %v1018_v60 = vadd.f32 %v1017_v59, %v1005_v47 }
 0x1d1   :  { %v1019_v44 = vpop.f32.mrf.mxu3 }
 0x1d9   :  { %v1030_v61 = vpop.f32.mrf.mxu3 }
 0x1da   :  { %v1031_v62 = vadd.f32 %v1030_v61, %v1018_v60 }
 0x1dc   :  { %1034 = vst [vmem:[%s1775_s6] sm:$0xff] %v1031_v62 }
 0x1e1   :  { %v1032_v63 = vpop.f32.mrf.mxu3 }

</bundles_post_ra>
